<compile_context>
chip_gen: v7x
topology: tpu7x:2x2x1
jax: 0.10.0
libtpu: 0.0.40
codegen_flags: <defaults>
</compile_context>

<pallas_src>
import functools

import jax
import jax.numpy as jnp
from jax.experimental import pallas as pl
from jax.experimental.pallas import tpu as pltpu


def _haar_conv_kernel(s_ref, w_ref, b_ref, o_ref):
    # s_ref: (4C, TM) packed corners [a|b|c|d] (channel-major, spatial on lanes)
    # w_ref: (C, 4C)  Haar-folded 1x1-conv weight
    # b_ref: (C, 1)   bias (broadcasts over lanes)
    # o_ref: (C, TM)
    out = jnp.dot(w_ref[...], s_ref[...], preferred_element_type=jnp.float32)
    o_ref[...] = (out + b_ref[...]).astype(o_ref.dtype)


@functools.partial(jax.jit, static_argnames=("tile_m",))
def haar_downsampling(x, conv_w, conv_b, *, tile_m=4096):
    """x: (N, C, H, W).  conv_w: (4C, C) (== PyTorch weight[:, :, 0, 0].T).
    conv_b: (C,).  Returns (N, C, H//2, W//2)."""
    N, C, H, W = x.shape
    H2, W2 = H // 2, W // 2
    S = H2 * W2

    # Match PyTorch stride-2 floor behaviour for odd H/W.
    x = x[:, :, : 2 * H2, : 2 * W2]

    # 2x2 patch corners, kept channel-major (no NHWC transpose): each (N, C, S).
    def corner(dh, dw):
        return x[:, :, dh::2, dw::2].reshape(N, C, S)

    # One packed slab, rows ordered [a(C) | b(C) | c(C) | d(C)].
    stacked = jnp.concatenate(
        [corner(0, 0), corner(0, 1), corner(1, 0), corner(1, 1)], axis=1
    )  # (N, 4C, S)

    # Fold the Haar transform (sign pattern + /4) into the conv weight.
    # conv_w[k, c_out] = PyTorch weight[c_out, k]; haar channel order [LL|LH|HL|HH].
    wt = conv_w.T.astype(jnp.float32)  # (C, 4C)
    w_ll, w_lh, w_hl, w_hh = (
        wt[:, 0:C],
        wt[:, C : 2 * C],
        wt[:, 2 * C : 3 * C],
        wt[:, 3 * C : 4 * C],
    )
    w_a = 0.25 * (w_ll + w_lh + w_hl + w_hh)
    w_b = 0.25 * (w_ll - w_lh + w_hl - w_hh)
    w_c = 0.25 * (w_ll + w_lh - w_hl - w_hh)
    w_d = 0.25 * (w_ll - w_lh - w_hl + w_hh)
    w_comb = jnp.concatenate([w_a, w_b, w_c, w_d], axis=1).astype(x.dtype)  # (C, 4C)
    bias2d = conv_b.reshape(C, 1).astype(jnp.float32)

    # Tile the lane (spatial) axis; keep double-buffered in+out under ~12 MiB so
    # the tile fits comfortably on every generation (v7x has only 64 MiB VMEM).
    itemsize = jnp.dtype(x.dtype).itemsize
    bytes_per_col = (4 * C + C) * itemsize * 2  # dbl-buffered input + output
    vmem_budget = 12 * 1024 * 1024
    tm_cap = max(128, (vmem_budget // bytes_per_col) // 128 * 128)
    tm = max(128, (min(tile_m, tm_cap) // 128) * 128)
    if S <= tm:
        tm = S  # full-extent block (legal even when < 128 / not a multiple of 128)

    grid = (N, pl.cdiv(S, tm))

    out = pl.pallas_call(
        _haar_conv_kernel,
        out_shape=jax.ShapeDtypeStruct((N, C, S), x.dtype),
        grid_spec=pltpu.PrefetchScalarGridSpec(
            num_scalar_prefetch=0,
            grid=grid,
            in_specs=[
                pl.BlockSpec((None, 4 * C, tm), lambda n, si: (n, 0, si)),  # corners
                pl.BlockSpec((C, 4 * C), lambda n, si: (0, 0)),             # weight
                pl.BlockSpec((C, 1), lambda n, si: (0, 0)),                 # bias
            ],
            out_specs=pl.BlockSpec((None, C, tm), lambda n, si: (n, 0, si)),
        ),
        compiler_params=pltpu.CompilerParams(
            dimension_semantics=("parallel", "parallel"),
            vmem_limit_bytes=32 * 1024 * 1024,
        ),
    )(stacked, w_comb, bias2d)

    return out.reshape(N, C, H2, W2)


def haar_downsampling_reference(x, conv_w, conv_b):
    """Pure-JAX reference matching the PyTorch module semantics (NCHW)."""
    a = x[:, :, 0::2, 0::2]
    b = x[:, :, 0::2, 1::2]
    c = x[:, :, 1::2, 0::2]
    d = x[:, :, 1::2, 1::2]
    comp_ll = (a + b + c + d) * 0.25
    comp_lh = (a - b + c - d) * 0.25
    comp_hl = (a + b - c - d) * 0.25
    comp_hh = (a - b - c + d) * 0.25
    haar = jnp.concatenate([comp_ll, comp_lh, comp_hl, comp_hh], axis=1)  # (N,4C,H2,W2)
    out = jnp.einsum("nkhw,kc->nchw", haar, conv_w) + conv_b.reshape(1, -1, 1, 1)
    return out


if __name__ == "__main__":
    key = jax.random.PRNGKey(0)
    k_x, k_w, k_b = jax.random.split(key, 3)

    N, C, H, W = 2, 4, 16, 16
    x = jax.random.normal(k_x, (N, C, H, W), dtype=jnp.float32)

    # Deterministic "conv" parameters for nn.Conv2d(4*C, C, 1):
    # PyTorch weight shape is (C, 4C, 1, 1); stored transposed as (4C, C).
    fan_in = 4 * C
    bound = 1.0 / (fan_in ** 0.5)
    conv_w = jax.random.uniform(k_w, (4 * C, C), minval=-bound, maxval=bound, dtype=jnp.float32)
    conv_b = jax.random.uniform(k_b, (C,), minval=-bound, maxval=bound, dtype=jnp.float32)

    out = haar_downsampling(x, conv_w, conv_b)
    out = jax.block_until_ready(out)

    ref = haar_downsampling_reference(x, conv_w, conv_b)
    assert out.shape == (N, C, H // 2, W // 2), out.shape
    assert jnp.allclose(out, ref, atol=1e-5, rtol=1e-5), float(jnp.max(jnp.abs(out - ref)))

    print("KERNEL_OK")
</pallas_src>

<mosaic_0001>
module attributes {stable_mosaic.version = 11 : i64} {
  func.func @_haar_conv_kernel(%arg0: i32, %arg1: i32, %arg2: memref<1x16x64xf32, #tpu.memory_space<vmem>>, %arg3: memref<4x16xf32, #tpu.memory_space<vmem>>, %arg4: memref<4x1xf32, #tpu.memory_space<vmem>>, %arg5: memref<1x4x64xf32, #tpu.memory_space<vmem>>) attributes {dimension_semantics = [#tpu.dimension_semantics<parallel>, #tpu.dimension_semantics<parallel>], iteration_bounds = array<i64: 2, 1>, scalar_prefetch = 0 : i64, scratch_operands = 0 : i64, tpu.core_type = #tpu.core_type<tc>, window_params = [{transform_indices = @transform_0, window_bounds = array<i64: 1, 16, 64>}, {pipeline_mode = #tpu.pipeline_mode<synchronous>, transform_indices = @transform_1, window_bounds = array<i64: 4, 16>}, {pipeline_mode = #tpu.pipeline_mode<synchronous>, transform_indices = @transform_2, window_bounds = array<i64: 4, 1>}, {transform_indices = @transform_3, window_bounds = array<i64: 1, 4, 64>}]} {
    %c0 = arith.constant 0 : index
    %c0_0 = arith.constant 0 : index
    %0 = vector.load %arg3[%c0, %c0_0] : memref<4x16xf32, #tpu.memory_space<vmem>>, vector<4x16xf32>
    %c0_1 = arith.constant 0 : index
    %c0_2 = arith.constant 0 : index
    %c0_3 = arith.constant 0 : index
    %1 = vector.load %arg2[%c0_1, %c0_2, %c0_3] : memref<1x16x64xf32, #tpu.memory_space<vmem>>, vector<1x16x64xf32>
    %2 = vector.shape_cast %1 : vector<1x16x64xf32> to vector<16x64xf32>
    %cst = arith.constant dense<0.000000e+00> : vector<4x64xf32>
    %3 = tpu.matmul %0, %2, %cst {dimension_numbers = #tpu.dot_dimension_numbers<[1], [0], [0], [1], [0, 0, 1, 1], [], []>} : vector<4x16xf32>, vector<16x64xf32>, vector<4x64xf32> -> vector<4x64xf32>
    %c0_4 = arith.constant 0 : index
    %c0_5 = arith.constant 0 : index
    %4 = vector.load %arg4[%c0_4, %c0_5] : memref<4x1xf32, #tpu.memory_space<vmem>>, vector<4x1xf32>
    %5 = vector.broadcast %4 : vector<4x1xf32> to vector<4x64xf32>
    %6 = arith.addf %3, %5 : vector<4x64xf32>
    %c0_6 = arith.constant 0 : index
    %c0_7 = arith.constant 0 : index
    %c0_8 = arith.constant 0 : index
    %7 = vector.load %arg5[%c0_6, %c0_7, %c0_8] : memref<1x4x64xf32, #tpu.memory_space<vmem>>, vector<1x4x64xf32>
    %8 = vector.shape_cast %7 : vector<1x4x64xf32> to vector<4x64xf32>
    %9 = vector.shape_cast %6 : vector<4x64xf32> to vector<1x4x64xf32>
    tpu.vector_store %arg5[%c0_6, %c0_7, %c0_8], %9 {strides = array<i32>} : memref<1x4x64xf32, #tpu.memory_space<vmem>>, vector<1x4x64xf32>,
    return
  }
  func.func @transform_0(%arg0: i32, %arg1: i32) -> (i32, i32, i32) {
    %c0_i32 = arith.constant 0 : i32
    %c0_i32_0 = arith.constant 0 : i32
    return %arg0, %c0_i32, %arg1 : i32, i32, i32
  }
  func.func @transform_1(%arg0: i32, %arg1: i32) -> (i32, i32) {
    %c0_i32 = arith.constant 0 : i32
    %c0_i32_0 = arith.constant 0 : i32
    %c0_i32_1 = arith.constant 0 : i32
    return %c0_i32, %c0_i32_0 : i32, i32
  }
  func.func @transform_2(%arg0: i32, %arg1: i32) -> (i32, i32) {
    %c0_i32 = arith.constant 0 : i32
    %c0_i32_0 = arith.constant 0 : i32
    %c0_i32_1 = arith.constant 0 : i32
    return %c0_i32, %c0_i32_0 : i32, i32
  }
  func.func @transform_3(%arg0: i32, %arg1: i32) -> (i32, i32, i32) {
    %c0_i32 = arith.constant 0 : i32
    %c0_i32_0 = arith.constant 0 : i32
    return %arg0, %c0_i32, %arg1 : i32, i32, i32
  }
}

</mosaic_0001>

<bundles_post_ra>
// kernel: haar_downsampling.1
= control target key start
LH: loop header
LB: loop body
LE: loop exit
PB: predicated region body
PF: predicated region fallthrough
CT: control target
= control target key end

     0   :  { %s464_s12 = smov 0   ;;  %s466_s13 = smov 0   ;;  %s503_s0 = inlined_call_operand.vmem [shape: f32[2,16,64], index: 0, kind: input, shape index: {}]   ;;  %s504_s1 = inlined_call_operand.vmem [shape: f32[4,16], index: 1, kind: input, shape index: {}]   ;;  %s505_s2 = inlined_call_operand.vmem [shape: f32[4,1], index: 2, kind: input, shape index: {}]   ;;  %s506_s3 = inlined_call_operand.vmem [shape: f32[2,4,64], index: 3, kind: output, shape index: {}]  }
   0x1   :  { %s468_s14 = smov 0  }
   0x2 LB: > { %s25_s15 = sadd.s32 1, %s434_s13  ;;  %p366_p0 = scmp.ge.s32.totalorder %s438_s14, 1  ;;  %s438_s14 = sphi %s468_s14, %s13_s14   ;;  %s434_s13 = sphi %s466_s13, %s508_s13   ;;  %s430_s12 = sphi %s464_s12, %s507_s12  }
   0x3   : > { %p27_p1 = scmp.ge.s32.totalorder %s25_s15, 2  ;;  %p156_p2 = scmp.lt.s32.totalorder %s438_s14, 3 }
   0x5   : > { %s510_s15 = smov (%p27_p1, %s25_s15), 0  ;;  %p157_p3 = pnand %p366_p0, %p156_p2 }
   0x6   : > { %p185_p4 = scmp.lt.s32.totalorder (!%p157_p3), %s430_s12, 1  ;;  %v440_v0 = vmov (!%p157_p3), 0.0|0.0   ;;  %vm441_vm0 = vmmov (!%p157_p3), 0   ;;  %v442_v1 = vmov (!%p157_p3), 0.0   ;;  %v203_v2 = vld [vmem:[%s505_s2] sm:$0xf] (!%p157_p3) }
   0x7   : > { %160 = sbr.rel (%p157_p3) target bundleno = 238 (0xee), region = 32  ;;  %384 = vmatprep.subr.bf16.mxu0 (!%p157_p3), %v440_v0  ;;  %381 = vmatprep.mubr.msk.f32.mxu0 (!%p157_p3), %vm441_vm0, %v442_v1  ;;  %v443_v3 = vmov (!%p157_p3), 0   ;;  %v200_v7 = vld [vmem:[%s504_s1] sm:$0xf] (!%p157_p3)  ;;  %vm209_vm1 = vcmask (!%p157_p3), 130048   ;;  %vm283_vm2 = vcmask (!%p157_p3), 519168  }
   0x8   : > { %415 = vset.pattern.permute.xlu0 (!%p157_p3), %v443_v3 }
   0x9   : > { %206 = vperm.xlu0 (!%p157_p3), %415, %v203_v2  }
   0xe   : > { %s512_s12 = smov (!%p185_p4, %s430_s12), 1 }
   0xf   : > { %s373_s18 = sshll.u32 %s512_s12, 4  ;;  %s369_s24 = sshll.u32 %s512_s12, 2 }
  0x10   : > { %s192_s21 = scalar_lea.vmem %s503_s0, %s373_s18  ;;  %s199_s27 = scalar_lea.vmem %s506_s3, %s369_s24 }
  0x11   : > { %v201_v4 = vld [vmem:[%s192_s21] sm:$0xff]  ;;  %v202_v5 = vld [vmem:[%s192_s21 + $0x8] sm:$0xff] }
  0x12   : > { %v385_v6 = vpack.c.bf16 %v202_v5, %v201_v4 }
  0x14   : > { %386 = vmatpush3.bf16.msra.mxu0 %v385_v6 }
  0x17   : > { %382 = vmatmul.mubr.msk.f32.vlgmr.msra.gmra.mrb[0].mxu0 %vm209_vm1, %v200_v7 }
  0x88   : > { %v207_v8 = vpop.permute.xlu0 %206 }
  0xea   : > { %v279_v9 = vpop.f32.mrb[0].mxu0 }
  0xeb   : > { %v280_v10 = vadd.f32 %v279_v9, %v207_v8  ;;  %v383_v11 = vpop.f32.mrb[1].mxu0 }
  0xed   : > { %284 = vst.msk [vmem:[%s199_s27] sm:$0xf] %vm283_vm2, %v280_v10 }
  0xee PF: > { %s13_s14 = sadd.s32 1, %s438_s14   ;;  %s507_s12 = smov %s434_s13 }
  0xef   : > { %p10_p5 = scmp.ge.s32.totalorder %s13_s14, 4   ;;  %s508_s13 = smov %s510_s15 }
  0xf1   :  { %12 = sbr.rel (!%p10_p5) target bundleno = 2 (0x2), region = 62 }

</bundles_post_ra>
